<compile_context>
chip_gen: v7x
topology: tpu7x:2x2x1
jax: 0.10.0
libtpu: 0.0.40
codegen_flags: <defaults>
</compile_context>

<pallas_src>
import jax
import jax.numpy as jnp
from jax.experimental import pallas as pl
from jax.experimental.pallas import tpu as pltpu


def _f_kernel(p_ref, o_ref):
    # p_ref: (3,) f32 in SMEM; o_ref: (1,) f32 in SMEM.
    # Targets [5, 0, 1] are compile-time immediates; pure scalar-ALU chain.
    d0 = p_ref[0] - 5.0
    d1 = p_ref[1]
    d2 = p_ref[2] - 1.0
    o_ref[0] = d0 * d0 + d1 * d1 + d2 * d2


def _net_forward_impl(pars):
    pars = pars.astype(jnp.float32)
    out = pl.pallas_call(
        _f_kernel,
        out_shape=jax.ShapeDtypeStruct((1,), jnp.float32),
        in_specs=[pl.BlockSpec(memory_space=pltpu.MemorySpace.SMEM)],
        out_specs=pl.BlockSpec(memory_space=pltpu.MemorySpace.SMEM),
        cost_estimate=pl.CostEstimate(flops=8, transcendentals=0,
                                      bytes_accessed=16),
    )(pars)
    return out[0]


@jax.custom_vjp
def net_forward(pars):
    """pars: (3,) f32 parameter vector.  Returns scalar f(pars)."""
    return _net_forward_impl(pars)


def _net_forward_fwd(pars):
    return _net_forward_impl(pars), pars


def _net_forward_bwd(pars, g):
    targets = jnp.array([5.0, 0.0, 1.0], dtype=jnp.float32)
    return (2.0 * (pars.astype(jnp.float32) - targets) * g,)


net_forward.defvjp(_net_forward_fwd, _net_forward_bwd)

# Single jitted entry point: pallas_call + slice fuse into one executable.
net_forward_jit = jax.jit(net_forward)


if __name__ == "__main__":
    key = jax.random.PRNGKey(0)
    # the module's f() indexes pars[0..2], so the parameter is a length-3 vector
    pars = jax.random.normal(key, (3,), dtype=jnp.float32)

    result = net_forward_jit(pars)
    jax.block_until_ready(result)

    # pure-JAX reference check (forward)
    ref = (pars[0] - 5.0) ** 2 + pars[1] ** 2 + (pars[2] - 1.0) ** 2
    assert jnp.allclose(result, ref, rtol=1e-6, atol=1e-6), (result, ref)

    # analytic-VJP check (gradient path used during optimization)
    grad = jax.jit(jax.grad(net_forward))(pars)
    jax.block_until_ready(grad)
    grad_ref = 2.0 * (pars - jnp.array([5.0, 0.0, 1.0], jnp.float32))
    assert jnp.allclose(grad, grad_ref, rtol=1e-6, atol=1e-6), (grad, grad_ref)

    print("KERNEL_OK")
</pallas_src>

<mosaic_0001>
module attributes {stable_mosaic.version = 11 : i64} {
  func.func @_f_kernel(%arg0: memref<3xf32, #tpu.memory_space<smem>>, %arg1: memref<1xf32, #tpu.memory_space<smem>>) attributes {dimension_semantics = [], scalar_prefetch = 0 : i64, scratch_operands = 0 : i64, tpu.core_type = #tpu.core_type<tc>} {
    %c0 = arith.constant 0 : index
    %0 = memref.load %arg0[%c0] : memref<3xf32, #tpu.memory_space<smem>>
    %cst = arith.constant 5.000000e+00 : f32
    %1 = arith.subf %0, %cst : f32
    %c1 = arith.constant 1 : index
    %2 = memref.load %arg0[%c1] : memref<3xf32, #tpu.memory_space<smem>>
    %c2 = arith.constant 2 : index
    %3 = memref.load %arg0[%c2] : memref<3xf32, #tpu.memory_space<smem>>
    %cst_0 = arith.constant 1.000000e+00 : f32
    %4 = arith.subf %3, %cst_0 : f32
    %5 = arith.mulf %1, %1 : f32
    %6 = arith.mulf %2, %2 : f32
    %7 = arith.addf %5, %6 : f32
    %8 = arith.mulf %4, %4 : f32
    %9 = arith.addf %7, %8 : f32
    %c0_1 = arith.constant 0 : index
    %10 = memref.load %arg1[%c0_1] : memref<1xf32, #tpu.memory_space<smem>>
    memref.store %9, %arg1[%c0_1] : memref<1xf32, #tpu.memory_space<smem>>
    return
  }
}

</mosaic_0001>

<bundles_post_ra>
// kernel: net_forward.1
= control target key start
LH: loop header
LB: loop body
LE: loop exit
PB: predicated region body
PF: predicated region fallthrough
CT: control target
= control target key end

     0   :  { %6 = vsyncpa [#allocation3], 0  ;;  %s112_s0 = inlined_call_operand.hbm [shape: f32[3], index: 0, kind: input, shape index: {}]   ;;  %s113_s1 = inlined_call_operand.hbm [shape: f32[1], index: 1, kind: output, shape index: {}]  }
   0x1   :  { %7 = vsyncpa [#allocation4], 0  ;;  %s52_s8 = scalar_lea.hbm %s112_s0, 16 }
   0x2   :  { %p53_p0 = scmp.ne.s32.totalorder %s112_s0, %s52_s8  ;;  %p56_p1 = scmp.lt.u32.totalorder %s52_s8, %s112_s0 }
   0x4   :  { %p58_p2 = pnand %p56_p1, %p53_p0 }
   0x6   :  { %61 = shalt.err (!%p58_p2)
}
   0x7   :  { %s76_s13 = smov [#allocation2]  }
   0x8   :  { %15 = dma.hbm_to_smem %s112_s0, 16, %s76_s13, [#allocation3]  }
   0x9   :  { %72 = dma.done.wait [#allocation3], 16  }
   0xa   :  { %73 = vsyncadd [#allocation3], 4294967280 }
   0xb   :  { %19 = sfence }
   0xc   :  { %s20_s16 = sld [smem:[#allocation2]]  ;;  %s47_s17 = sld [smem:[#allocation2 + $0x1]] }
   0xd   :  { %s48_s18 = sld [smem:[#allocation2 + $0x2]]  ;;  %s62_s28 = scalar_lea.hbm %s113_s1, 16 }
   0xe   :  { %p63_p3 = scmp.ne.s32.totalorder %s113_s1, %s62_s28  ;;  %p66_p4 = scmp.lt.u32.totalorder %s62_s28, %s113_s1 }
  0x10   :  { %p68_p5 = pnand %p66_p4, %p63_p3 }
  0x12   :  { %s46_s19 = sadd.f32 -5.0, %s20_s16  ;;  %s26_s20 = smul.f32 %s47_s17, %s47_s17 }
  0x13   :  { %s49_s21 = sadd.f32 -1.0, %s48_s18 }
  0x14   :  { %s25_s22 = smul.f32 %s46_s19, %s46_s19 }
  0x15   :  { %s28_s23 = smul.f32 %s49_s21, %s49_s21 }
  0x16   :  { %s27_s24 = sadd.f32 %s26_s20, %s25_s22 }
  0x18   :  { %s29_s25 = sadd.f32 %s28_s23, %s27_s24 }
  0x1a   :  { %31 = sst [smem:[#allocation5]] %s29_s25 }
  0x1b   :  { %71 = shalt.err (!%p68_p5)
}
  0x1c   :  { %s77_s3 = smov [#allocation5]  }
  0x1d   :  { %39 = dma.smem_to_hbm %s77_s3, 16, %s113_s1, [#allocation4]  }
  0x1e   :  { %74 = dma.done.wait [#allocation4], 16  }
  0x1f   :  { %75 = vsyncadd [#allocation4], 4294967280 }
  0x20   :  { %43 = sfence }
  0x21   :  { %44 = vsyncpa [#allocation3], 1 }
  0x22   :  { %45 = vsyncpa [#allocation4], 1 }

</bundles_post_ra>
